<compile_context>
chip_gen: v5e
topology: v5e:2x2
jax: 0.10.0
libtpu: 0.0.40
codegen_flags: <defaults>
</compile_context>

<pallas_src>
import functools

import jax
import jax.numpy as jnp
from jax import lax
from jax.experimental import pallas as pl
from jax.experimental.pallas import tpu as pltpu

TRAJ_Z_DIM = 10
GRID_Z_DIM = 64
HIDDEN = 20
BN_EPS = 1e-5

_TB_CAP = 4096  # max batch rows per grid step (perf review: 2048-8192)


def _round_up(x, m):
    return ((x + m - 1) // m) * m


# ---------------------------------------------------------------------------
# Fused kernel: grid = (2 phases, nt batch tiles), phase axis outermost.
#   phase 0: h_tile = traj @ W1a^T + grid @ W1b^T  -> VMEM-resident h scratch,
#            accumulate per-feature sum and shifted sum-of-squares.
#   phase 1: fold BN stats to scale/shift, apply BN + PReLU + Linear(20->10),
#            write batch-major output tile.
# ---------------------------------------------------------------------------
def _mergenet_fused_kernel(traj_ref, grid_ref, w1a_ref, w1b_ref, w2_ref,
                           gamma_ref, beta_ref, b2_ref, prelu_ref,
                           out_ref,
                           h_ref, sum_ref, m2_ref, c_ref,
                           *, batch, batch_pad):
    p = pl.program_id(0)          # phase
    i = pl.program_id(1)          # batch tile

    @pl.when(p == 0)
    def _produce():
        nt_dims = (((1,), (1,)), ((), ()))          # A @ B^T (contract features)
        x_t = traj_ref[...].astype(jnp.float32)     # (TB, 10)
        x_g = grid_ref[...].astype(jnp.float32)     # (TB, 64)
        h = lax.dot_general(x_t, w1a_ref[...], nt_dims,
                            preferred_element_type=jnp.float32)
        h = h + lax.dot_general(x_g, w1b_ref[...], nt_dims,
                                preferred_element_type=jnp.float32)
        # NOTE: Linear bias b1 omitted on purpose -- it cancels exactly under
        # training-mode BatchNorm and keeps zero-padded rows at exactly 0.
        h_ref[i] = h                                # VMEM-resident, no HBM trip

        tb = h.shape[0]

        @pl.when(i == 0)
        def _init_stats():
            # Shift constant for the compensated single-pass variance: the
            # first tile's per-feature mean (any value in the data range is
            # valid; this kills E[x^2]-E[x]^2 cancellation).
            c_ref[...] = jnp.sum(h, axis=0, keepdims=True) * (1.0 / tb)
            sum_ref[...] = jnp.zeros_like(sum_ref)
            m2_ref[...] = jnp.zeros_like(m2_ref)

        c = c_ref[...]
        sum_ref[...] += jnp.sum(h, axis=0, keepdims=True)
        hc = h - c
        m2_ref[...] += jnp.sum(hc * hc, axis=0, keepdims=True)

    @pl.when(p == 1)
    def _apply():
        h = h_ref[i]                                # (TB, HIDDEN) from VMEM
        inv_b = 1.0 / batch
        n_pad = float(batch_pad - batch)

        # Fold training-mode BatchNorm into one scale/shift per feature.
        # Padded rows contributed h == 0, so remove their n_pad * c^2 from the
        # shifted second moment and divide by the true batch size.
        c = c_ref[...]
        mean = sum_ref[...] * inv_b
        m2 = m2_ref[...] - n_pad * (c * c)
        var = m2 * inv_b - (mean - c) * (mean - c)  # biased variance, as in BN
        scale = gamma_ref[...] * lax.rsqrt(var + BN_EPS)
        shift = beta_ref[...] - mean * scale

        hn = h * scale + shift                      # (TB, HIDDEN)
        a = prelu_ref[0]                            # shared PReLU slope (SMEM)
        act = jnp.where(hn >= 0, hn, a * hn)
        out = lax.dot_general(act, w2_ref[...], (((1,), (1,)), ((), ())),
                              preferred_element_type=jnp.float32)
        out_ref[...] = (out + b2_ref[...]).astype(out_ref.dtype)


def mergenet_forward(traj_z, grid_z, params, *, tile_b=_TB_CAP):
    B = traj_z.shape[0]
    if B == 0:
        return jnp.zeros((0, TRAJ_Z_DIM), jnp.float32)

    traj = traj_z                                   # kernel upcasts; bf16 OK
    grid_flat = grid_z.reshape(-1, GRID_Z_DIM)

    # Adaptive batch tiling: pad only to a multiple of 128 lanes, then pick the
    # smallest tile count with TB <= tile_b so the total padding stays small.
    tile_cap = max(128, (tile_b // 128) * 128)
    b128 = _round_up(B, 128)
    nt = -(-b128 // tile_cap)
    TB = _round_up(-(-b128 // nt), 128)
    B_pad = TB * nt

    if B_pad != B:
        pad = B_pad - B
        traj = jnp.pad(traj, ((0, pad), (0, 0)))
        grid_flat = jnp.pad(grid_flat, ((0, pad), (0, 0)))

    w1 = params["w1"]                               # (HIDDEN, 74), PyTorch (out, in)
    w1a = w1[:, :TRAJ_Z_DIM]                        # (HIDDEN, 10)
    w1b = w1[:, TRAJ_Z_DIM:]                        # (HIDDEN, 64)

    # VMEM budget: double-buffered (TB,10)/(TB,64)/(TB,10) blocks are lane-
    # padded to 128 (512 B/row each) plus the persistent (nt, TB, HIDDEN)
    # h scratch (also lane-padded).  Keep the working set modest so it also
    # fits v7x's 64 MiB physical VMEM.
    blk_bytes = 4 * TB * (128 + 128 + 128)
    scratch_bytes = 4 * B_pad * 128
    vmem_need = 2 * blk_bytes + scratch_bytes + (4 << 20)
    vmem_limit = max(32 << 20, min(vmem_need, 100 << 20))
    # TODO(synk): for batches so large that the VMEM-resident h scratch no
    # longer fits (B_pad beyond ~10^5 rows), fall back to a two-call path that
    # spills h to HBM (optionally in bf16).

    kernel = functools.partial(_mergenet_fused_kernel, batch=B, batch_pad=B_pad)

    # Inputs are only consumed in phase 0; freeze their block index afterwards
    # so no extra DMA is issued during phase 1.  Output blocks are only written
    # in phase 1, so pin them to block 0 during phase 0 (never flushed early).
    in_idx = lambda p, i: ((1 - p) * i + p * (nt - 1), 0)
    const_idx = lambda p, i: (0, 0)
    out_idx = lambda p, i: (p * i, 0)

    out_pad = pl.pallas_call(
        kernel,
        grid=(2, nt),
        in_specs=[
            pl.BlockSpec((TB, TRAJ_Z_DIM), in_idx),
            pl.BlockSpec((TB, GRID_Z_DIM), in_idx),
            pl.BlockSpec((HIDDEN, TRAJ_Z_DIM), const_idx),
            pl.BlockSpec((HIDDEN, GRID_Z_DIM), const_idx),
            pl.BlockSpec((TRAJ_Z_DIM, HIDDEN), const_idx),
            pl.BlockSpec((1, HIDDEN), const_idx),
            pl.BlockSpec((1, HIDDEN), const_idx),
            pl.BlockSpec((1, TRAJ_Z_DIM), const_idx),
            pl.BlockSpec(memory_space=pltpu.MemorySpace.SMEM),
        ],
        out_specs=pl.BlockSpec((TB, TRAJ_Z_DIM), out_idx),
        out_shape=jax.ShapeDtypeStruct((B_pad, TRAJ_Z_DIM), jnp.float32),
        scratch_shapes=[
            pltpu.VMEM((nt, TB, HIDDEN), jnp.float32),   # h, VMEM-resident
            pltpu.VMEM((1, HIDDEN), jnp.float32),        # sum(h)
            pltpu.VMEM((1, HIDDEN), jnp.float32),        # sum((h - c)^2)
            pltpu.VMEM((1, HIDDEN), jnp.float32),        # shift constant c
        ],
        compiler_params=pltpu.CompilerParams(
            # Both grid axes carry cross-step state (h scratch + BN stats), so
            # they must be "arbitrary"; the fused kernel therefore does not
            # shard across v7x's 2 TensorCores (acceptable: it is HBM-bound
            # and both cores share HBM bandwidth anyway).
            dimension_semantics=("arbitrary", "arbitrary"),
            vmem_limit_bytes=vmem_limit),
    )(traj, grid_flat, w1a, w1b, params["w2"],
      params["bn_gamma"].reshape(1, HIDDEN),
      params["bn_beta"].reshape(1, HIDDEN),
      params["b2"].reshape(1, TRAJ_Z_DIM),
      params["prelu_w"])

    # Output is already batch-major (B_pad, 10); just drop the padded rows.
    return out_pad[:B]


def init_params(key):
    k1, k2, k3, k4 = jax.random.split(key, 4)
    in_dim = TRAJ_Z_DIM + GRID_Z_DIM
    return {
        # PyTorch nn.Linear layout: weight is (out_features, in_features).
        "w1": jax.random.normal(k1, (HIDDEN, in_dim), jnp.float32)
              * (1.0 / jnp.sqrt(in_dim)),
        "b1": jax.random.normal(k2, (HIDDEN,), jnp.float32) * 0.01,
        # BatchNorm1d defaults: weight=1, bias=0.
        "bn_gamma": jnp.ones((HIDDEN,), jnp.float32),
        "bn_beta": jnp.zeros((HIDDEN,), jnp.float32),
        # PReLU default: single shared slope 0.25.
        "prelu_w": jnp.full((1,), 0.25, jnp.float32),
        "w2": jax.random.normal(k3, (TRAJ_Z_DIM, HIDDEN), jnp.float32)
              * (1.0 / jnp.sqrt(HIDDEN)),
        "b2": jax.random.normal(k4, (TRAJ_Z_DIM,), jnp.float32) * 0.01,
    }


def reference_forward(traj_z, grid_z, params):
    # Pure-JAX reference matching the PyTorch module exactly (b1 included --
    # it must cancel under training-mode BatchNorm; the assert checks this).
    x = jnp.concatenate([traj_z.astype(jnp.float32),
                         grid_z.reshape(-1, GRID_Z_DIM).astype(jnp.float32)],
                        axis=1)
    h = x @ params["w1"].T + params["b1"]
    mean = jnp.mean(h, axis=0, keepdims=True)
    var = jnp.mean((h - mean) ** 2, axis=0, keepdims=True)
    hn = (h - mean) / jnp.sqrt(var + BN_EPS)
    hn = hn * params["bn_gamma"] + params["bn_beta"]
    a = params["prelu_w"][0]
    act = jnp.where(hn >= 0, hn, a * hn)
    return act @ params["w2"].T + params["b2"]


# TODO(synk): nn.BatchNorm1d's running_mean / running_var buffer updates (a
# training-time side effect, not part of the returned tensor) are not produced.

if __name__ == "__main__":
    key = jax.random.PRNGKey(0)
    k_param, k_traj, k_grid = jax.random.split(key, 3)

    B = 8
    traj_z = jax.random.normal(k_traj, (B, TRAJ_Z_DIM), jnp.float32)
    grid_z = jax.random.normal(k_grid, (B, 8, 8), jnp.float32)  # .view(-1, 64)

    params = init_params(k_param)

    fwd = jax.jit(lambda t, g: mergenet_forward(t, g, params))
    out = jax.block_until_ready(fwd(traj_z, grid_z))

    ref = reference_forward(traj_z, grid_z, params)
    assert out.shape == (B, TRAJ_Z_DIM)
    assert jnp.allclose(out, ref, atol=1e-4, rtol=1e-4)

    print("KERNEL_OK")
</pallas_src>

<mosaic_0001>
module attributes {stable_mosaic.version = 11 : i64} {
  func.func @_mergenet_fused_kernel(%arg0: i32, %arg1: i32, %arg2: memref<128x10xf32, #tpu.memory_space<vmem>>, %arg3: memref<128x64xf32, #tpu.memory_space<vmem>>, %arg4: memref<20x10xf32, #tpu.memory_space<vmem>>, %arg5: memref<20x64xf32, #tpu.memory_space<vmem>>, %arg6: memref<10x20xf32, #tpu.memory_space<vmem>>, %arg7: memref<1x20xf32, #tpu.memory_space<vmem>>, %arg8: memref<1x20xf32, #tpu.memory_space<vmem>>, %arg9: memref<1x10xf32, #tpu.memory_space<vmem>>, %arg10: memref<1xf32, #tpu.memory_space<smem>>, %arg11: memref<128x10xf32, #tpu.memory_space<vmem>>, %arg12: memref<1x128x20xf32, #tpu.memory_space<vmem>>, %arg13: memref<1x20xf32, #tpu.memory_space<vmem>>, %arg14: memref<1x20xf32, #tpu.memory_space<vmem>>, %arg15: memref<1x20xf32, #tpu.memory_space<vmem>>) attributes {dimension_semantics = [#tpu.dimension_semantics<arbitrary>, #tpu.dimension_semantics<arbitrary>], iteration_bounds = array<i64: 2, 1>, scalar_prefetch = 0 : i64, scratch_operands = 4 : i64, tpu.core_type = #tpu.core_type<tc>, window_params = [{transform_indices = @transform_0, window_bounds = array<i64: 128, 10>}, {transform_indices = @transform_1, window_bounds = array<i64: 128, 64>}, {pipeline_mode = #tpu.pipeline_mode<synchronous>, transform_indices = @transform_2, window_bounds = array<i64: 20, 10>}, {pipeline_mode = #tpu.pipeline_mode<synchronous>, transform_indices = @transform_3, window_bounds = array<i64: 20, 64>}, {pipeline_mode = #tpu.pipeline_mode<synchronous>, transform_indices = @transform_4, window_bounds = array<i64: 10, 20>}, {pipeline_mode = #tpu.pipeline_mode<synchronous>, transform_indices = @transform_5, window_bounds = array<i64: 1, 20>}, {pipeline_mode = #tpu.pipeline_mode<synchronous>, transform_indices = @transform_6, window_bounds = array<i64: 1, 20>}, {pipeline_mode = #tpu.pipeline_mode<synchronous>, transform_indices = @transform_7, window_bounds = array<i64: 1, 10>}, {transform_indices = @transform_8, window_bounds = array<i64: 1>}, {transform_indices = @transform_9, window_bounds = array<i64: 128, 10>}]} {
    %c0_i32 = arith.constant 0 : i32
    %0 = arith.cmpi eq, %arg0, %c0_i32 : i32
    %1 = arith.extui %0 : i1 to i32
    %c0_i32_0 = arith.constant 0 : i32
    %2 = arith.cmpi ne, %1, %c0_i32_0 : i32
    scf.if %2 {
      %c0 = arith.constant 0 : index
      %c0_2 = arith.constant 0 : index
      %6 = vector.load %arg2[%c0, %c0_2] : memref<128x10xf32, #tpu.memory_space<vmem>>, vector<128x10xf32>
      %c0_3 = arith.constant 0 : index
      %c0_4 = arith.constant 0 : index
      %7 = vector.load %arg3[%c0_3, %c0_4] : memref<128x64xf32, #tpu.memory_space<vmem>>, vector<128x64xf32>
      %c0_5 = arith.constant 0 : index
      %c0_6 = arith.constant 0 : index
      %8 = vector.load %arg4[%c0_5, %c0_6] : memref<20x10xf32, #tpu.memory_space<vmem>>, vector<20x10xf32>
      %cst = arith.constant dense<0.000000e+00> : vector<128x20xf32>
      %9 = tpu.matmul %6, %8, %cst {dimension_numbers = #tpu.dot_dimension_numbers<[1], [1], [0], [0], [0, 0, 1, 0], [], []>} : vector<128x10xf32>, vector<20x10xf32>, vector<128x20xf32> -> vector<128x20xf32>
      %c0_7 = arith.constant 0 : index
      %c0_8 = arith.constant 0 : index
      %10 = vector.load %arg5[%c0_7, %c0_8] : memref<20x64xf32, #tpu.memory_space<vmem>>, vector<20x64xf32>
      %cst_9 = arith.constant dense<0.000000e+00> : vector<128x20xf32>
      %11 = tpu.matmul %7, %10, %cst_9 {dimension_numbers = #tpu.dot_dimension_numbers<[1], [1], [0], [0], [0, 0, 1, 0], [], []>} : vector<128x64xf32>, vector<20x64xf32>, vector<128x20xf32> -> vector<128x20xf32>
      %12 = arith.addf %9, %11 : vector<128x20xf32>
      %13 = arith.index_cast %arg1 : i32 to index
      %c0_10 = arith.constant 0 : index
      %c0_11 = arith.constant 0 : index
      %14 = vector.load %arg12[%13, %c0_10, %c0_11] : memref<1x128x20xf32, #tpu.memory_space<vmem>>, vector<1x128x20xf32>
      %15 = vector.shape_cast %14 : vector<1x128x20xf32> to vector<128x20xf32>
      %16 = vector.shape_cast %12 : vector<128x20xf32> to vector<1x128x20xf32>
      tpu.vector_store %arg12[%13, %c0_10, %c0_11], %16 {strides = array<i32>} : memref<1x128x20xf32, #tpu.memory_space<vmem>>, vector<1x128x20xf32>,
      %c0_i32_12 = arith.constant 0 : i32
      %17 = arith.cmpi eq, %arg1, %c0_i32_12 : i32
      %18 = arith.extui %17 : i1 to i32
      %c0_i32_13 = arith.constant 0 : i32
      %19 = arith.cmpi ne, %18, %c0_i32_13 : i32
      scf.if %19 {
        %cst_26 = arith.constant dense<0.000000e+00> : vector<20xf32>
        %34 = vector.multi_reduction <add>, %12, %cst_26 [0] : vector<128x20xf32> to vector<20xf32>
        %35 = vector.shape_cast %34 : vector<20xf32> to vector<1x20xf32>
        %cst_27 = arith.constant 7.812500e-03 : f32
        %36 = vector.broadcast %cst_27 : f32 to vector<1x20xf32>
        %37 = arith.mulf %35, %36 : vector<1x20xf32>
        %c0_28 = arith.constant 0 : index
        %c0_29 = arith.constant 0 : index
        %38 = vector.load %arg15[%c0_28, %c0_29] : memref<1x20xf32, #tpu.memory_space<vmem>>, vector<1x20xf32>
        tpu.vector_store %arg15[%c0_28, %c0_29], %37 {strides = array<i32>} : memref<1x20xf32, #tpu.memory_space<vmem>>, vector<1x20xf32>,
        %cst_30 = arith.constant 0.000000e+00 : f32
        %39 = vector.broadcast %cst_30 : f32 to vector<1x20xf32>
        %c0_31 = arith.constant 0 : index
        %c0_32 = arith.constant 0 : index
        %40 = vector.load %arg13[%c0_31, %c0_32] : memref<1x20xf32, #tpu.memory_space<vmem>>, vector<1x20xf32>
        tpu.vector_store %arg13[%c0_31, %c0_32], %39 {strides = array<i32>} : memref<1x20xf32, #tpu.memory_space<vmem>>, vector<1x20xf32>,
        %cst_33 = arith.constant 0.000000e+00 : f32
        %41 = vector.broadcast %cst_33 : f32 to vector<1x20xf32>
        %c0_34 = arith.constant 0 : index
        %c0_35 = arith.constant 0 : index
        %42 = vector.load %arg14[%c0_34, %c0_35] : memref<1x20xf32, #tpu.memory_space<vmem>>, vector<1x20xf32>
        tpu.vector_store %arg14[%c0_34, %c0_35], %41 {strides = array<i32>} : memref<1x20xf32, #tpu.memory_space<vmem>>, vector<1x20xf32>,
      } else {
      }
      %c0_14 = arith.constant 0 : index
      %c0_15 = arith.constant 0 : index
      %20 = vector.load %arg15[%c0_14, %c0_15] : memref<1x20xf32, #tpu.memory_space<vmem>>, vector<1x20xf32>
      %c0_16 = arith.constant 0 : index
      %c0_17 = arith.constant 0 : index
      %21 = vector.load %arg13[%c0_16, %c0_17] : memref<1x20xf32, #tpu.memory_space<vmem>>, vector<1x20xf32>
      %cst_18 = arith.constant dense<0.000000e+00> : vector<20xf32>
      %22 = vector.multi_reduction <add>, %12, %cst_18 [0] : vector<128x20xf32> to vector<20xf32>
      %23 = vector.shape_cast %22 : vector<20xf32> to vector<1x20xf32>
      %24 = arith.addf %21, %23 : vector<1x20xf32>
      %c0_19 = arith.constant 0 : index
      %c0_20 = arith.constant 0 : index
      %25 = vector.load %arg13[%c0_19, %c0_20] : memref<1x20xf32, #tpu.memory_space<vmem>>, vector<1x20xf32>
      tpu.vector_store %arg13[%c0_19, %c0_20], %24 {strides = array<i32>} : memref<1x20xf32, #tpu.memory_space<vmem>>, vector<1x20xf32>,
      %26 = vector.broadcast %20 : vector<1x20xf32> to vector<128x20xf32>
      %27 = arith.subf %12, %26 : vector<128x20xf32>
      %c0_21 = arith.constant 0 : index
      %c0_22 = arith.constant 0 : index
      %28 = vector.load %arg14[%c0_21, %c0_22] : memref<1x20xf32, #tpu.memory_space<vmem>>, vector<1x20xf32>
      %29 = arith.mulf %27, %27 : vector<128x20xf32>
      %cst_23 = arith.constant dense<0.000000e+00> : vector<20xf32>
      %30 = vector.multi_reduction <add>, %29, %cst_23 [0] : vector<128x20xf32> to vector<20xf32>
      %31 = vector.shape_cast %30 : vector<20xf32> to vector<1x20xf32>
      %32 = arith.addf %28, %31 : vector<1x20xf32>
      %c0_24 = arith.constant 0 : index
      %c0_25 = arith.constant 0 : index
      %33 = vector.load %arg14[%c0_24, %c0_25] : memref<1x20xf32, #tpu.memory_space<vmem>>, vector<1x20xf32>
      tpu.vector_store %arg14[%c0_24, %c0_25], %32 {strides = array<i32>} : memref<1x20xf32, #tpu.memory_space<vmem>>, vector<1x20xf32>,
    } else {
    }
    %c1_i32 = arith.constant 1 : i32
    %3 = arith.cmpi eq, %arg0, %c1_i32 : i32
    %4 = arith.extui %3 : i1 to i32
    %c0_i32_1 = arith.constant 0 : i32
    %5 = arith.cmpi ne, %4, %c0_i32_1 : i32
    scf.if %5 {
      %6 = arith.index_cast %arg1 : i32 to index
      %c0 = arith.constant 0 : index
      %c0_2 = arith.constant 0 : index
      %7 = vector.load %arg12[%6, %c0, %c0_2] : memref<1x128x20xf32, #tpu.memory_space<vmem>>, vector<1x128x20xf32>
      %8 = vector.shape_cast %7 : vector<1x128x20xf32> to vector<128x20xf32>
      %c0_3 = arith.constant 0 : index
      %c0_4 = arith.constant 0 : index
      %9 = vector.load %arg15[%c0_3, %c0_4] : memref<1x20xf32, #tpu.memory_space<vmem>>, vector<1x20xf32>
      %c0_5 = arith.constant 0 : index
      %c0_6 = arith.constant 0 : index
      %10 = vector.load %arg13[%c0_5, %c0_6] : memref<1x20xf32, #tpu.memory_space<vmem>>, vector<1x20xf32>
      %cst = arith.constant 1.250000e-01 : f32
      %11 = vector.broadcast %cst : f32 to vector<1x20xf32>
      %12 = arith.mulf %10, %11 : vector<1x20xf32>
      %c0_7 = arith.constant 0 : index
      %c0_8 = arith.constant 0 : index
      %13 = vector.load %arg14[%c0_7, %c0_8] : memref<1x20xf32, #tpu.memory_space<vmem>>, vector<1x20xf32>
      %14 = arith.mulf %9, %9 : vector<1x20xf32>
      %cst_9 = arith.constant 1.200000e+02 : f32
      %15 = vector.broadcast %cst_9 : f32 to vector<1x20xf32>
      %16 = arith.mulf %15, %14 : vector<1x20xf32>
      %17 = arith.subf %13, %16 : vector<1x20xf32>
      %cst_10 = arith.constant 1.250000e-01 : f32
      %18 = vector.broadcast %cst_10 : f32 to vector<1x20xf32>
      %19 = arith.mulf %17, %18 : vector<1x20xf32>
      %20 = arith.subf %12, %9 : vector<1x20xf32>
      %21 = arith.subf %12, %9 : vector<1x20xf32>
      %22 = arith.mulf %20, %21 : vector<1x20xf32>
      %23 = arith.subf %19, %22 : vector<1x20xf32>
      %c0_11 = arith.constant 0 : index
      %c0_12 = arith.constant 0 : index
      %24 = vector.load %arg7[%c0_11, %c0_12] : memref<1x20xf32, #tpu.memory_space<vmem>>, vector<1x20xf32>
      %cst_13 = arith.constant 9.99999974E-6 : f32
      %25 = vector.broadcast %cst_13 : f32 to vector<1x20xf32>
      %26 = arith.addf %23, %25 : vector<1x20xf32>
      %27 = math.rsqrt %26 : vector<1x20xf32>
      %28 = arith.mulf %24, %27 : vector<1x20xf32>
      %c0_14 = arith.constant 0 : index
      %c0_15 = arith.constant 0 : index
      %29 = vector.load %arg8[%c0_14, %c0_15] : memref<1x20xf32, #tpu.memory_space<vmem>>, vector<1x20xf32>
      %30 = arith.mulf %12, %28 : vector<1x20xf32>
      %31 = arith.subf %29, %30 : vector<1x20xf32>
      %32 = vector.broadcast %28 : vector<1x20xf32> to vector<128x20xf32>
      %33 = arith.mulf %8, %32 : vector<128x20xf32>
      %34 = vector.broadcast %31 : vector<1x20xf32> to vector<128x20xf32>
      %35 = arith.addf %33, %34 : vector<128x20xf32>
      %c0_16 = arith.constant 0 : index
      %36 = memref.load %arg10[%c0_16] : memref<1xf32, #tpu.memory_space<smem>>
      %cst_17 = arith.constant 0.000000e+00 : f32
      %37 = vector.broadcast %cst_17 : f32 to vector<128x20xf32>
      %38 = arith.cmpf oge, %35, %37 : vector<128x20xf32>
      %39 = vector.broadcast %36 : f32 to vector<128x20xf32>
      %40 = arith.mulf %39, %35 : vector<128x20xf32>
      %41 = arith.select %38, %35, %40 : vector<128x20xi1>, vector<128x20xf32>
      %c0_18 = arith.constant 0 : index
      %c0_19 = arith.constant 0 : index
      %42 = vector.load %arg6[%c0_18, %c0_19] : memref<10x20xf32, #tpu.memory_space<vmem>>, vector<10x20xf32>
      %cst_20 = arith.constant dense<0.000000e+00> : vector<128x10xf32>
      %43 = tpu.matmul %41, %42, %cst_20 {dimension_numbers = #tpu.dot_dimension_numbers<[1], [1], [0], [0], [0, 0, 1, 0], [], []>} : vector<128x20xf32>, vector<10x20xf32>, vector<128x10xf32> -> vector<128x10xf32>
      %c0_21 = arith.constant 0 : index
      %c0_22 = arith.constant 0 : index
      %44 = vector.load %arg9[%c0_21, %c0_22] : memref<1x10xf32, #tpu.memory_space<vmem>>, vector<1x10xf32>
      %45 = vector.broadcast %44 : vector<1x10xf32> to vector<128x10xf32>
      %46 = arith.addf %43, %45 : vector<128x10xf32>
      %c0_23 = arith.constant 0 : index
      %c0_24 = arith.constant 0 : index
      %47 = vector.load %arg11[%c0_23, %c0_24] : memref<128x10xf32, #tpu.memory_space<vmem>>, vector<128x10xf32>
      tpu.vector_store %arg11[%c0_23, %c0_24], %46 {strides = array<i32>} : memref<128x10xf32, #tpu.memory_space<vmem>>, vector<128x10xf32>,
    } else {
    }
    return
  }
  func.func @transform_0(%arg0: i32, %arg1: i32) -> (i32, i32) {
    %c1_i32 = arith.constant 1 : i32
    %0 = arith.subi %c1_i32, %arg0 : i32
    %1 = arith.muli %0, %arg1 : i32
    %c0_i32 = arith.constant 0 : i32
    %2 = arith.muli %arg0, %c0_i32 : i32
    %3 = arith.addi %1, %2 : i32
    %c0_i32_0 = arith.constant 0 : i32
    %c0_i32_1 = arith.constant 0 : i32
    return %3, %c0_i32_0 : i32, i32
  }
  func.func @transform_1(%arg0: i32, %arg1: i32) -> (i32, i32) {
    %c1_i32 = arith.constant 1 : i32
    %0 = arith.subi %c1_i32, %arg0 : i32
    %1 = arith.muli %0, %arg1 : i32
    %c0_i32 = arith.constant 0 : i32
    %2 = arith.muli %arg0, %c0_i32 : i32
    %3 = arith.addi %1, %2 : i32
    %c0_i32_0 = arith.constant 0 : i32
    %c0_i32_1 = arith.constant 0 : i32
    return %3, %c0_i32_0 : i32, i32
  }
  func.func @transform_2(%arg0: i32, %arg1: i32) -> (i32, i32) {
    %c0_i32 = arith.constant 0 : i32
    %c0_i32_0 = arith.constant 0 : i32
    %c0_i32_1 = arith.constant 0 : i32
    return %c0_i32, %c0_i32_0 : i32, i32
  }
  func.func @transform_3(%arg0: i32, %arg1: i32) -> (i32, i32) {
    %c0_i32 = arith.constant 0 : i32
    %c0_i32_0 = arith.constant 0 : i32
    %c0_i32_1 = arith.constant 0 : i32
    return %c0_i32, %c0_i32_0 : i32, i32
  }
  func.func @transform_4(%arg0: i32, %arg1: i32) -> (i32, i32) {
    %c0_i32 = arith.constant 0 : i32
    %c0_i32_0 = arith.constant 0 : i32
    %c0_i32_1 = arith.constant 0 : i32
    return %c0_i32, %c0_i32_0 : i32, i32
  }
  func.func @transform_5(%arg0: i32, %arg1: i32) -> (i32, i32) {
    %c0_i32 = arith.constant 0 : i32
    %c0_i32_0 = arith.constant 0 : i32
    %c0_i32_1 = arith.constant 0 : i32
    return %c0_i32, %c0_i32_0 : i32, i32
  }
  func.func @transform_6(%arg0: i32, %arg1: i32) -> (i32, i32) {
    %c0_i32 = arith.constant 0 : i32
    %c0_i32_0 = arith.constant 0 : i32
    %c0_i32_1 = arith.constant 0 : i32
    return %c0_i32, %c0_i32_0 : i32, i32
  }
  func.func @transform_7(%arg0: i32, %arg1: i32) -> (i32, i32) {
    %c0_i32 = arith.constant 0 : i32
    %c0_i32_0 = arith.constant 0 : i32
    %c0_i32_1 = arith.constant 0 : i32
    return %c0_i32, %c0_i32_0 : i32, i32
  }
  func.func @transform_8(%arg0: i32, %arg1: i32) -> i32 {
    %c0_i32 = arith.constant 0 : i32
    %c0_i32_0 = arith.constant 0 : i32
    return %c0_i32 : i32
  }
  func.func @transform_9(%arg0: i32, %arg1: i32) -> (i32, i32) {
    %0 = arith.muli %arg0, %arg1 : i32
    %c0_i32 = arith.constant 0 : i32
    %c0_i32_0 = arith.constant 0 : i32
    return %0, %c0_i32 : i32, i32
  }
}

</mosaic_0001>

<bundles_post_ra>
// kernel: _lambda_.1
= control target key start
LH: loop header
LB: loop body
LE: loop exit
PB: predicated region body
PF: predicated region fallthrough
CT: control target
= control target key end

     0   :  { %s1425_s11 = smov 0   ;;  %s1427_s12 = smov 0   ;;  %s1899_s0 = inlined_call_operand.vmem [shape: f32[128,10], index: 0, kind: input, shape index: {}]   ;;  %s1900_s1 = inlined_call_operand.vmem [shape: f32[128,64], index: 1, kind: input, shape index: {}]   ;;  %s1901_s2 = inlined_call_operand.vmem [shape: f32[20,10], index: 2, kind: input, shape index: {}]   ;;  %s1902_s3 = inlined_call_operand.vmem [shape: f32[20,64], index: 3, kind: input, shape index: {}]   ;;  %s1903_s4 = inlined_call_operand.vmem [shape: f32[10,20], index: 4, kind: input, shape index: {}]   ;;  %s1904_s5 = inlined_call_operand.vmem [shape: f32[1,20], index: 5, kind: input, shape index: {}]   ;;  %s1905_s6 = inlined_call_operand.vmem [shape: f32[1,20], index: 6, kind: input, shape index: {}]   ;;  %s1906_s7 = inlined_call_operand.vmem [shape: f32[1,10], index: 7, kind: input, shape index: {}]   ;;  %s1907_s8 = inlined_call_operand.<no memory space> [shape: f32[1], index: 8, kind: input, shape index: {}]   ;;  %s1908_s9 = inlined_call_operand.vmem [shape: f32[128,10], index: 9, kind: output, shape index: {}]  }
   0x1   :  { %14 = sst [smem:[#allocation6]] %s1907_s8  ;;  %s1429_s13 = smov 0  }
   0x2 LB: > { %s32_s8 = sadd.s32 1, %s1365_s12  ;;  %p1244_p0 = scmp.ge.s32.totalorder %s1369_s13, 1  ;;  %s1369_s13 = sphi %s1429_s13, %s20_s13   ;;  %s1365_s12 = sphi %s1427_s12, %s1910_s12   ;;  %s1361_s11 = sphi %s1425_s11, %s1909_s11  }
   0x3   : > { %p34_p1 = scmp.ge.s32.totalorder %s32_s8, 2  ;;  %p330_p2 = scmp.lt.s32.totalorder %s1369_s13, 3 }
   0x5   : > { %s1912_s8 = smov (%p34_p1, %s32_s8), 0  ;;  %p331_p3 = pnand %p1244_p0, %p330_p2 }
   0x6   : > { %p1245_p4 = scmp.ne.s32.totalorder (!%p331_p3), %s1361_s11, 0 }
   0x7   : > { %334 = sbr.rel (%p331_p3) target bundleno = 518 (0x206), region = 56 }
   0xc   : > { %407 = sbr.rel (%p1245_p4) target bundleno = 307 (0x133), region = 60 }
  0x11   : > { %v445_v0 = vld [vmem:[%s1902_s3 + $0x10] sm:$0xf]  ;;  %vm446_vm0 = vcmask 523264   ;;  %vm569_vm1 = vcmask 80896   ;;  %v444_v2 = vld [vmem:[%s1902_s3 + $0x8] sm:$0xff]  ;;  %v443_v4 = vld [vmem:[%s1902_s3] sm:$0xff] }
  0x12   : > { %v442_v1 = vld [vmem:[%s1901_s2 + $0x10] sm:$0xf]  ;;  %1246 = vmatpush.xpose.msk.msra.mxu0 %vm446_vm0, %v445_v0  ;;  %v441_v3 = vld [vmem:[%s1901_s2 + $0x8] sm:$0xff]  ;;  %1307 = vmatpush.xpose.msk.msra.mxu2 %vm446_vm0, %v445_v0  ;;  %v440_v5 = vld [vmem:[%s1901_s2] sm:$0xff]  ;;  %vm694_vm2 = vcmask 162816   ;;  %vm753_vm3 = vcmask 155648  }
  0x13   : > { %1265 = vmatpush.xpose.msk.msra.mxu1 %vm569_vm1, %v442_v1  ;;  %1310 = vmatpush.xpose.msk.msra.mxu3 %vm569_vm1, %v442_v1  ;;  %v424_v6 = vld [vmem:[%s1900_s1] sm:$0xff]  ;;  %v425_v10 = vld [vmem:[%s1900_s1 + $0x8] sm:$0xff]  ;;  %v426_v14 = vld [vmem:[%s1900_s1 + $0x10] sm:$0xff] }
  0x14   : > { %v408_v7 = vld [vmem:[%s1899_s0] sm:$0xff]  ;;  %v409_v11 = vld [vmem:[%s1899_s0 + $0x8] sm:$0xff]  ;;  %v410_v15 = vld [vmem:[%s1899_s0 + $0x10] sm:$0xff] }
  0x15   : > { %v432_v8 = vld [vmem:[%s1900_s1 + $0x40] sm:$0xff]  ;;  %v433_v12 = vld [vmem:[%s1900_s1 + $0x48] sm:$0xff]  ;;  %v434_v16 = vld [vmem:[%s1900_s1 + $0x50] sm:$0xff] }
  0x16   : > { %1247 = vmatpush.xpose.msk.msra.mxu0 %vm446_vm0, %v444_v2  ;;  %1308 = vmatpush.xpose.msk.msra.mxu2 %vm446_vm0, %v444_v2  ;;  %v416_v9 = vld [vmem:[%s1899_s0 + $0x40] sm:$0xff]  ;;  %v417_v13 = vld [vmem:[%s1899_s0 + $0x48] sm:$0xff]  ;;  %v418_v17 = vld [vmem:[%s1899_s0 + $0x50] sm:$0xff] }
  0x17   : > { %1266 = vmatpush.xpose.msk.msra.mxu1 %vm569_vm1, %v441_v3  ;;  %1311 = vmatpush.xpose.msk.msra.mxu3 %vm569_vm1, %v441_v3  ;;  %v427_v18 = vld [vmem:[%s1900_s1 + $0x18] sm:$0xff]  ;;  %v428_v22 = vld [vmem:[%s1900_s1 + $0x20] sm:$0xff]  ;;  %v429_v26 = vld [vmem:[%s1900_s1 + $0x28] sm:$0xff] }
  0x18   : > { %v411_v19 = vld [vmem:[%s1899_s0 + $0x18] sm:$0xff]  ;;  %v412_v23 = vld [vmem:[%s1899_s0 + $0x20] sm:$0xff]  ;;  %v413_v27 = vld [vmem:[%s1899_s0 + $0x28] sm:$0xff] }
  0x19   : > { %v435_v20 = vld [vmem:[%s1900_s1 + $0x58] sm:$0xff]  ;;  %v436_v24 = vld [vmem:[%s1900_s1 + $0x60] sm:$0xff]  ;;  %v437_v28 = vld [vmem:[%s1900_s1 + $0x68] sm:$0xff] }
  0x1a   : > { %1248 = vmatpush.xpose.msk.msra.mxu0 %vm446_vm0, %v443_v4  ;;  %1309 = vmatpush.xpose.msk.msra.mxu2 %vm446_vm0, %v443_v4  ;;  %v419_v21 = vld [vmem:[%s1899_s0 + $0x58] sm:$0xff]  ;;  %v420_v25 = vld [vmem:[%s1899_s0 + $0x60] sm:$0xff]  ;;  %v421_v29 = vld [vmem:[%s1899_s0 + $0x68] sm:$0xff] }
  0x1b   : > { %1267 = vmatpush.xpose.msk.msra.mxu1 %vm569_vm1, %v440_v5  ;;  %1312 = vmatpush.xpose.msk.msra.mxu3 %vm569_vm1, %v440_v5  ;;  %v430_v30 = vld [vmem:[%s1900_s1 + $0x30] sm:$0xff]  ;;  %v431_v34 = vld [vmem:[%s1900_s1 + $0x38] sm:$0xff] }
  0x1c   : > { %v414_v31 = vld [vmem:[%s1899_s0 + $0x30] sm:$0xff]  ;;  %v415_v35 = vld [vmem:[%s1899_s0 + $0x38] sm:$0xff] }
  0x1d   : > { %1249 = vmatmul.msk.f32.vlgmr.msra.gmra.mxu0 %vm446_vm0, %v424_v6  ;;  %1257 = vmatmul.msk.f32.vlgmr.msra.gmra.mxu2 %vm446_vm0, %v432_v8  ;;  %v438_v32 = vld [vmem:[%s1900_s1 + $0x70] sm:$0xff]  ;;  %v439_v36 = vld [vmem:[%s1900_s1 + $0x78] sm:$0xff] }
  0x1e   : > { %1268 = vmatmul.msk.f32.vlgmr.msra.gmra.mxu1 %vm569_vm1, %v408_v7  ;;  %1276 = vmatmul.msk.f32.vlgmr.msra.gmra.mxu3 %vm569_vm1, %v416_v9  ;;  %v422_v33 = vld [vmem:[%s1899_s0 + $0x70] sm:$0xff]  ;;  %v423_v37 = vld [vmem:[%s1899_s0 + $0x78] sm:$0xff] }
  0x25   : > { %1250 = vmatmul.msk.f32.gmra.mxu0 %vm446_vm0, %v425_v10  ;;  %1258 = vmatmul.msk.f32.gmra.mxu2 %vm446_vm0, %v433_v12 }
  0x26   : > { %1269 = vmatmul.msk.f32.gmra.mxu1 %vm569_vm1, %v409_v11  ;;  %1277 = vmatmul.msk.f32.gmra.mxu3 %vm569_vm1, %v417_v13 }
  0x2d   : > { %1251 = vmatmul.msk.f32.gmra.mxu0 %vm446_vm0, %v426_v14  ;;  %1259 = vmatmul.msk.f32.gmra.mxu2 %vm446_vm0, %v434_v16 }
  0x2e   : > { %1270 = vmatmul.msk.f32.gmra.mxu1 %vm569_vm1, %v410_v15  ;;  %1278 = vmatmul.msk.f32.gmra.mxu3 %vm569_vm1, %v418_v17 }
  0x35   : > { %1252 = vmatmul.msk.f32.gmra.mxu0 %vm446_vm0, %v427_v18  ;;  %1260 = vmatmul.msk.f32.gmra.mxu2 %vm446_vm0, %v435_v20 }
  0x36   : > { %1271 = vmatmul.msk.f32.gmra.mxu1 %vm569_vm1, %v411_v19  ;;  %1279 = vmatmul.msk.f32.gmra.mxu3 %vm569_vm1, %v419_v21  ;;  %v1371_v21 = vmov 0.0  }
  0x37   : > { %755 = vst.msk [vmem:[#allocation3] sm:$0x1] %vm753_vm3, %v1371_v21 }
  0x38   : > { %756 = vst.msk [vmem:[#allocation4] sm:$0x1] %vm753_vm3, %v1371_v21 }
  0x3d   : > { %1253 = vmatmul.msk.f32.gmra.mxu0 %vm446_vm0, %v428_v22  ;;  %1261 = vmatmul.msk.f32.gmra.mxu2 %vm446_vm0, %v436_v24 }
  0x3e   : > { %1272 = vmatmul.msk.f32.gmra.mxu1 %vm569_vm1, %v412_v23  ;;  %1280 = vmatmul.msk.f32.gmra.mxu3 %vm569_vm1, %v420_v25 }
  0x45   : > { %1254 = vmatmul.msk.f32.gmra.mxu0 %vm446_vm0, %v429_v26  ;;  %1262 = vmatmul.msk.f32.gmra.mxu2 %vm446_vm0, %v437_v28 }
  0x46   : > { %1273 = vmatmul.msk.f32.gmra.mxu1 %vm569_vm1, %v413_v27  ;;  %1281 = vmatmul.msk.f32.gmra.mxu3 %vm569_vm1, %v421_v29 }
  0x4d   : > { %1255 = vmatmul.msk.f32.gmra.mxu0 %vm446_vm0, %v430_v30  ;;  %1263 = vmatmul.msk.f32.gmra.mxu2 %vm446_vm0, %v438_v32 }
  0x4e   : > { %1274 = vmatmul.msk.f32.gmra.mxu1 %vm569_vm1, %v414_v31  ;;  %1282 = vmatmul.msk.f32.gmra.mxu3 %vm569_vm1, %v422_v33 }
  0x55   : > { %1256 = vmatmul.msk.f32.gmra.mxu0 %vm446_vm0, %v431_v34  ;;  %1264 = vmatmul.msk.f32.gmra.mxu2 %vm446_vm0, %v439_v36 }
  0x56   : > { %1275 = vmatmul.msk.f32.gmra.mxu1 %vm569_vm1, %v415_v35  ;;  %1283 = vmatmul.msk.f32.gmra.mxu3 %vm569_vm1, %v423_v37 }
  0x9a   : > { %v521_v38 = vpop.f32.mrf.mxu0 }
  0x9b   : > { %v644_v39 = vpop.f32.mrf.mxu1 }
  0x9c   : > { %v1604_v40 = vadd.f32 %v644_v39, %v521_v38 }
  0x9e   : > { %695 = vst.msk [vmem:[#allocation2] sm:$0xff] %vm694_vm2, %v1604_v40  ;;  %v715_v8 = vsel %vm694_vm2, %v1604_v40, 0.0 }
  0xa0   : > { %v545_v41 = vpop.f32.mrf.mxu2 }
  0xa1   : > { %v668_v42 = vpop.f32.mrf.mxu3 }
  0xa2   : > { %v524_v43 = vpop.f32.mrf.mxu0  ;;  %v1608_v45 = vadd.f32 %v668_v42, %v545_v41 }
  0xa3   : > { %v647_v44 = vpop.f32.mrf.mxu1 }
  0xa4   : > { %v1610_v46 = vadd.f32 %v647_v44, %v524_v43  ;;  %703 = vst.msk [vmem:[#allocation2 + $0x40] sm:$0xff] %vm694_vm2, %v1608_v45  ;;  %v730_v35 = vsel %vm694_vm2, %v1608_v45, 0.0 }
  0xa6   : > { %696 = vst.msk [vmem:[#allocation2 + $0x8] sm:$0xff] %vm694_vm2, %v1610_v46  ;;  %v716_v7 = vsel %vm694_vm2, %v1610_v46, 0.0 }
  0xa7   : > { %v717_v12 = vadd.f32 %v716_v7, %v715_v8 }
  0xa8   : > { %v548_v47 = vpop.f32.mrf.mxu2 }
  0xa9   : > { %v671_v48 = vpop.f32.mrf.mxu3 }
  0xaa   : > { %v527_v49 = vpop.f32.mrf.mxu0  ;;  %v1616_v51 = vadd.f32 %v671_v48, %v548_v47 }
  0xab   : > { %v650_v50 = vpop.f32.mrf.mxu1 }
  0xac   : > { %v1618_v52 = vadd.f32 %v650_v50, %v527_v49  ;;  %704 = vst.msk [vmem:[#allocation2 + $0x48] sm:$0xff] %vm694_vm2, %v1616_v51  ;;  %v732_v37 = vsel %vm694_vm2, %v1616_v51, 0.0 }
  0xae   : > { %697 = vst.msk [vmem:[#allocation2 + $0x10] sm:$0xff] %vm694_vm2, %v1618_v52  ;;  %v718_v9 = vsel %vm694_vm2, %v1618_v52, 0.0 }
  0xaf   : > { %v719_v18 = vadd.f32 %v718_v9, %v717_v12 }
  0xb0   : > { %v551_v53 = vpop.f32.mrf.mxu2 }
  0xb1   : > { %v674_v54 = vpop.f32.mrf.mxu3 }
  0xb2   : > { %v530_v55 = vpop.f32.mrf.mxu0  ;;  %v1624_v57 = vadd.f32 %v674_v54, %v551_v53 }
  0xb3   : > { %v653_v56 = vpop.f32.mrf.mxu1 }
  0xb4   : > { %v1626_v58 = vadd.f32 %v653_v56, %v530_v55  ;;  %705 = vst.msk [vmem:[#allocation2 + $0x50] sm:$0xff] %vm694_vm2, %v1624_v57  ;;  %v734_v43 = vsel %vm694_vm2, %v1624_v57, 0.0 }
  0xb6   : > { %698 = vst.msk [vmem:[#allocation2 + $0x18] sm:$0xff] %vm694_vm2, %v1626_v58  ;;  %v720_v16 = vsel %vm694_vm2, %v1626_v58, 0.0 }
  0xb7   : > { %v721_v20 = vadd.f32 %v720_v16, %v719_v18 }
  0xb8   : > { %v554_v59 = vpop.f32.mrf.mxu2 }
  0xb9   : > { %v677_v60 = vpop.f32.mrf.mxu3 }
  0xba   : > { %v533_v61 = vpop.f32.mrf.mxu0  ;;  %v1632_v63 = vadd.f32 %v677_v60, %v554_v59 }
  0xbb   : > { %v656_v62 = vpop.f32.mrf.mxu1 }
  0xbc   : > { %v1634_v0 = vadd.f32 %v656_v62, %v533_v61  ;;  %706 = vst.msk [vmem:[#allocation2 + $0x58] sm:$0xff] %vm694_vm2, %v1632_v63  ;;  %v736_v47 = vsel %vm694_vm2, %v1632_v63, 0.0 }
  0xbe   : > { %699 = vst.msk [vmem:[#allocation2 + $0x20] sm:$0xff] %vm694_vm2, %v1634_v0  ;;  %v722_v19 = vsel %vm694_vm2, %v1634_v0, 0.0 }
  0xbf   : > { %v723_v23 = vadd.f32 %v722_v19, %v721_v20 }
  0xc0   : > { %v557_v1 = vpop.f32.mrf.mxu2 }
  0xc1   : > { %v680_v2 = vpop.f32.mrf.mxu3 }
  0xc2   : > { %v536_v3 = vpop.f32.mrf.mxu0  ;;  %v1640_v5 = vadd.f32 %v680_v2, %v557_v1 }
  0xc3   : > { %v659_v4 = vpop.f32.mrf.mxu1 }
  0xc4   : > { %v1642_v6 = vadd.f32 %v659_v4, %v536_v3  ;;  %707 = vst.msk [vmem:[#allocation2 + $0x60] sm:$0xff] %vm694_vm2, %v1640_v5  ;;  %v738_v49 = vsel %vm694_vm2, %v1640_v5, 0.0  ;;  %v758_v4 = vld [vmem:[#allocation3] sm:$0x1] }
  0xc6   : > { %700 = vst.msk [vmem:[#allocation2 + $0x28] sm:$0xff] %vm694_vm2, %v1642_v6  ;;  %v724_v22 = vsel %vm694_vm2, %v1642_v6, 0.0 }
  0xc7   : > { %v725_v27 = vadd.f32 %v724_v22, %v723_v23 }
  0xc8   : > { %v560_v10 = vpop.f32.mrf.mxu2 }
  0xc9   : > { %v683_v11 = vpop.f32.mrf.mxu3 }
  0xca   : > { %v539_v13 = vpop.f32.mrf.mxu0  ;;  %v1654_v15 = vadd.f32 %v683_v11, %v560_v10 }
  0xcb   : > { %v662_v14 = vpop.f32.mrf.mxu1 }
  0xcc   : > { %v1658_v17 = vadd.f32 %v662_v14, %v539_v13  ;;  %708 = vst.msk [vmem:[#allocation2 + $0x68] sm:$0xff] %vm694_vm2, %v1654_v15  ;;  %v740_v53 = vsel %vm694_vm2, %v1654_v15, 0.0 }
  0xce   : > { %701 = vst.msk [vmem:[#allocation2 + $0x30] sm:$0xff] %vm694_vm2, %v1658_v17  ;;  %v726_v24 = vsel %vm694_vm2, %v1658_v17, 0.0 }
  0xcf   : > { %v727_v32 = vadd.f32 %v726_v24, %v725_v27 }
  0xd0   : > { %v563_v25 = vpop.f32.mrf.mxu2 }
  0xd1   : > { %v686_v26 = vpop.f32.mrf.mxu3 }
  0xd2   : > { %v542_v28 = vpop.f32.mrf.mxu0  ;;  %v1672_v30 = vadd.f32 %v686_v26, %v563_v25 }
  0xd3   : > { %v665_v29 = vpop.f32.mrf.mxu1 }
  0xd4   : > { %v666_v31 = vadd.f32 %v665_v29, %v542_v28  ;;  %709 = vst.msk [vmem:[#allocation2 + $0x70] sm:$0xff] %vm694_vm2, %v1672_v30  ;;  %v742_v55 = vsel %vm694_vm2, %v1672_v30, 0.0 }
  0xd6   : > { %702 = vst.msk [vmem:[#allocation2 + $0x38] sm:$0xff] %vm694_vm2, %v666_v31  ;;  %v728_v33 = vsel %vm694_vm2, %v666_v31, 0.0 }
  0xd7   : > { %v729_v34 = vadd.f32 %v728_v33, %v727_v32 }
  0xd8   : > { %v566_v38 = vpop.f32.mrf.mxu2 }
  0xd9   : > { %v731_v36 = vadd.f32 %v730_v35, %v729_v34  ;;  %v689_v39 = vpop.f32.mrf.mxu3 }
  0xda   : > { %v1682_v42 = vadd.f32 %v689_v39, %v566_v38 }
  0xdb   : > { %v733_v41 = vadd.f32 %v732_v37, %v731_v36 }
  0xdc   : > { %710 = vst.msk [vmem:[#allocation2 + $0x78] sm:$0xff] %vm694_vm2, %v1682_v42  ;;  %v744_v56 = vsel %vm694_vm2, %v1682_v42, 0.0 }
  0xdd   : > { %v735_v44 = vadd.f32 %v734_v43, %v733_v41 }
  0xdf   : > { %v737_v48 = vadd.f32 %v736_v47, %v735_v44 }
  0xe1   : > { %v739_v50 = vadd.f32 %v738_v49, %v737_v48 }
  0xe3   : > { %v741_v54 = vadd.f32 %v740_v53, %v739_v50 }
  0xe5   : > { %v743_v59 = vadd.f32 %v742_v55, %v741_v54 }
  0xe7   : > { %v745_v60 = vadd.f32 %v744_v56, %v743_v59 }
  0xe9   : > { %v746_v61 = vrot.slane %v745_v60, 4 }
  0xeb   : > { %v747_v62 = vadd.f32 %v746_v61, %v745_v60 }
  0xed   : > { %v748_v1 = vrot.slane %v747_v62, 2 }
  0xef   : > { %v749_v2 = vadd.f32 %v748_v1, %v747_v62 }
  0xf1   : > { %v750_v3 = vrot.slane %v749_v2, 1 }
  0xf3   : > { %v751_v7 = vadd.f32 %v750_v3, %v749_v2 }
  0xf5   : > { %v752_v8 = vmul.f32 0.0078125, %v751_v7  ;;  %v796_v9 = vadd.f32 %v758_v4, %v751_v7 }
  0xf7   : > { %754 = vst.msk [vmem:[#allocation5] sm:$0x1] %vm753_vm3, %v752_v8 }
  0xf8   : > { %798 = vst.msk [vmem:[#allocation3] sm:$0x1] %vm753_vm3, %v796_v9 }
  0xfe   : > { %v757_v10 = vld [vmem:[#allocation5] sm:$0x1] }
  0xff   : > { %v800_v11 = vperm.slane %v757_v10, 0 }
 0x101   : > { %v802_v12 = vsub.f32 %v1604_v40, %v800_v11  ;;  %v803_v13 = vsub.f32 %v1610_v46, %v800_v11  ;;  %v804_v14 = vsub.f32 %v1618_v52, %v800_v11  ;;  %v805_v16 = vsub.f32 %v1626_v58, %v800_v11 }
 0x102   : > { %v806_v20 = vsub.f32 %v1634_v0, %v800_v11  ;;  %v807_v22 = vsub.f32 %v1642_v6, %v800_v11  ;;  %v808_v40 = vsub.f32 %v1658_v17, %v800_v11  ;;  %v809_v58 = vsub.f32 %v666_v31, %v800_v11 }
 0x103   : > { %v819_v18 = vmul.f32 %v802_v12, %v802_v12  ;;  %v820_v19 = vmul.f32 %v803_v13, %v803_v13  ;;  %v821_v21 = vmul.f32 %v804_v14, %v804_v14  ;;  %v822_v23 = vmul.f32 %v805_v16, %v805_v16 }
 0x104   : > { %v823_v46 = vmul.f32 %v806_v20, %v806_v20  ;;  %v824_v28 = vmul.f32 %v807_v22, %v807_v22  ;;  %v810_v32 = vsub.f32 %v1608_v45, %v800_v11  ;;  %v825_v6 = vmul.f32 %v808_v40, %v808_v40 }
 0x105   : > { %v835_v24 = vsel %vm694_vm2, %v819_v18, 0.0  ;;  %v836_v25 = vsel %vm694_vm2, %v820_v19, 0.0  ;;  %v838_v52 = vsel %vm694_vm2, %v821_v21, 0.0  ;;  %v840_v29 = vsel %vm694_vm2, %v822_v23, 0.0  ;;  %v818_v18 = vld [vmem:[#allocation4] sm:$0x1] }
 0x106   : > { %v837_v26 = vadd.f32 %v836_v25, %v835_v24  ;;  %v842_v33 = vsel %vm694_vm2, %v823_v46, 0.0  ;;  %v811_v35 = vsub.f32 %v1616_v51, %v800_v11  ;;  %v826_v36 = vmul.f32 %v809_v58, %v809_v58 }
 0x107   : > { %v844_v17 = vsel %vm694_vm2, %v824_v28, 0.0  ;;  %v812_v38 = vsub.f32 %v1624_v57, %v800_v11  ;;  %v827_v39 = vmul.f32 %v810_v32, %v810_v32  ;;  %v846_v31 = vsel %vm694_vm2, %v825_v6, 0.0 }
 0x108   : > { %v839_v27 = vadd.f32 %v838_v52, %v837_v26  ;;  %v813_v43 = vsub.f32 %v1632_v63, %v800_v11  ;;  %v828_v44 = vmul.f32 %v811_v35, %v811_v35  ;;  %v848_v45 = vsel %vm694_vm2, %v826_v36, 0.0 }
 0x109   : > { %v814_v48 = vsub.f32 %v1640_v5, %v800_v11  ;;  %v829_v49 = vmul.f32 %v812_v38, %v812_v38  ;;  %v850_v51 = vsel %vm694_vm2, %v827_v39, 0.0  ;;  %v815_v53 = vsub.f32 %v1654_v15, %v800_v11 }
 0x10a   : > { %v841_v0 = vadd.f32 %v840_v29, %v839_v27  ;;  %v830_v54 = vmul.f32 %v813_v43, %v813_v43  ;;  %v852_v57 = vsel %vm694_vm2, %v828_v44, 0.0  ;;  %v816_v56 = vsub.f32 %v1672_v30, %v800_v11 }
 0x10b   : > { %v831_v59 = vmul.f32 %v814_v48, %v814_v48  ;;  %v854_v63 = vsel %vm694_vm2, %v829_v49, 0.0  ;;  %v817_v61 = vsub.f32 %v1682_v42, %v800_v11  ;;  %v832_v62 = vmul.f32 %v815_v53, %v815_v53 }
 0x10c   : > { %v843_v34 = vadd.f32 %v842_v33, %v841_v0  ;;  %v856_v5 = vsel %vm694_vm2, %v830_v54, 0.0  ;;  %v833_v2 = vmul.f32 %v816_v56, %v816_v56 }
 0x10d   : > { %v858_v3 = vsel %vm694_vm2, %v831_v59, 0.0  ;;  %v834_v4 = vmul.f32 %v817_v61, %v817_v61  ;;  %v860_v7 = vsel %vm694_vm2, %v832_v62, 0.0 }
 0x10e   : > { %v845_v37 = vadd.f32 %v844_v17, %v843_v34  ;;  %v862_v30 = vsel %vm694_vm2, %v833_v2, 0.0 }
 0x10f   : > { %v864_v10 = vsel %vm694_vm2, %v834_v4, 0.0 }
 0x110   : > { %v847_v41 = vadd.f32 %v846_v31, %v845_v37 }
 0x112   : > { %v849_v47 = vadd.f32 %v848_v45, %v847_v41 }
 0x114   : > { %v851_v50 = vadd.f32 %v850_v51, %v849_v47 }
 0x116   : > { %v853_v55 = vadd.f32 %v852_v57, %v851_v50 }
 0x118   : > { %v855_v60 = vadd.f32 %v854_v63, %v853_v55 }
 0x11a   : > { %v857_v1 = vadd.f32 %v856_v5, %v855_v60 }
 0x11c   : > { %v859_v15 = vadd.f32 %v858_v3, %v857_v1 }
 0x11e   : > { %v861_v8 = vadd.f32 %v860_v7, %v859_v15 }
 0x120   : > { %v863_v9 = vadd.f32 %v862_v30, %v861_v8 }
 0x122   : > { %v865_v12 = vadd.f32 %v864_v10, %v863_v9 }
 0x124   : > { %v866_v13 = vrot.slane %v865_v12, 4 }
 0x126   : > { %v867_v42 = vadd.f32 %v866_v13, %v865_v12 }
 0x128   : > { %v868_v11 = vrot.slane %v867_v42, 2 }
 0x12a   : > { %v869_v14 = vadd.f32 %v868_v11, %v867_v42 }
 0x12c   : > { %v870_v16 = vrot.slane %v869_v14, 1 }
 0x12e   : > { %v871_v19 = vadd.f32 %v870_v16, %v869_v14 }
 0x130   : > { %v872_v20 = vadd.f32 %v871_v19, %v818_v18 }
 0x132   : > { %873 = vst.msk [vmem:[#allocation4] sm:$0x1] %vm753_vm3, %v872_v20 }
 0x133 PF: > { %p1284_p5 = scmp.ne.s32.totalorder %s1361_s11, 1 }
 0x134   : > { %s961_s23 = sld [smem:[#allocation6]] (!%p1284_p5) }
 0x135   : > { %877 = sbr.rel (%p1284_p5) target bundleno = 518 (0x206), region = 68 }
 0x13a   : > { %v1012_v21 = vld [vmem:[%s1903_s4 + $0x8] sm:$0x3]  ;;  %vm1017_vm4 = vcmask 162816   ;;  %v896_v22 = vld [vmem:[#allocation5] sm:$0x1]  ;;  %v1765_v5 = vstv %s961_s23  ;;  %v890_v9 = vld [vmem:[#allocation2 + $0x50] sm:$0xff] }
 0x13b   : > { %1314 = vmatpush.xpose.msk.msra.mxu2 %vm1017_vm4, %v1012_v21  ;;  %1315 = vmatpush.xpose.msk.msra.mxu3 %vm1017_vm4, %v1012_v21  ;;  %v897_v23 = vld [vmem:[#allocation3] sm:$0x1]  ;;  %v900_v26 = vmul.f32 %v896_v22, %v896_v22  ;;  %v899_v40 = vld [vmem:[#allocation4] sm:$0x1]  ;;  %v889_v48 = vld [vmem:[#allocation2 + $0x48] sm:$0xff] }
 0x13c   : > { %v1011_v24 = vld [vmem:[%s1903_s4] sm:$0xff]  ;;  %1285 = vmatpush.xpose.msk.msra.mxu0 %vm1017_vm4, %v1012_v21  ;;  %1313 = vmatpush.xpose.msk.msra.mxu1 %vm1017_vm4, %v1012_v21  ;;  %v898_v25 = vmul.f32 0.125, %v897_v23  ;;  %v893_v49 = vld [vmem:[#allocation2 + $0x68] sm:$0xff]  ;;  %v894_v10 = vld [vmem:[#allocation2 + $0x70] sm:$0xff] }
 0x13d   : > { %v901_v46 = vmul.f32 120.0, %v900_v26  ;;  %v907_v36 = vld [vmem:[%s1904_s5] sm:$0x1]  ;;  %v881_v51 = vld [vmem:[#allocation2 + $0x8] sm:$0xff]  ;;  %v882_v42 = vld [vmem:[#allocation2 + $0x10] sm:$0xff] }
 0x13e   : > { %v904_v52 = vsub.f32 %v898_v25, %v896_v22  ;;  %v888_v38 = vld [vmem:[#allocation2 + $0x40] sm:$0xff]  ;;  %v885_v50 = vld [vmem:[#allocation2 + $0x28] sm:$0xff]  ;;  %v886_v16 = vld [vmem:[#allocation2 + $0x30] sm:$0xff] }
 0x13f   : > { %1317 = vmatpush.xpose.msk.msra.mxu2 %vm1017_vm4, %v1011_v24  ;;  %1318 = vmatpush.xpose.msk.msra.mxu3 %vm1017_vm4, %v1011_v24  ;;  %v902_v27 = vsub.f32 %v899_v40, %v901_v46  ;;  %v920_v31 = vld [vmem:[%s1905_s6] sm:$0x1] }
 0x140   : > { %v905_v58 = vmul.f32 %v904_v52, %v904_v52  ;;  %1286 = vmatpush.xpose.msk.msra.mxu0 %vm1017_vm4, %v1011_v24  ;;  %1316 = vmatpush.xpose.msk.msra.mxu1 %vm1017_vm4, %v1011_v24  ;;  %v892_v41 = vld [vmem:[#allocation2 + $0x60] sm:$0xff] }
 0x141   : > { %v903_v28 = vmul.f32 0.125, %v902_v27  ;;  %v880_v43 = vld [vmem:[#allocation2] sm:$0xff] }
 0x142   : > { %v884_v44 = vld [vmem:[#allocation2 + $0x20] sm:$0xff] }
 0x143   : > { %v906_v29 = vsub.f32 %v903_v28, %v905_v58 }
 0x145   : > { %v908_v0 = vadd.f32 1e-05, %v906_v29 }
 0x147   : > { %1345 = vrsqrt.f32 %v908_v0  ;;  %vm915_vm5 = vweird.f32 %v908_v0 }
 0x14d   : > { %v1346_v32 = vpop.eup %1345 }
 0x14e   : > { %v910_v6 = vmul.f32 %v1346_v32, %v908_v0  ;;  %vm916_vm6 = vweird.f32 %v1346_v32  ;;  %v891_v0 = vld [vmem:[#allocation2 + $0x58] sm:$0xff] }
 0x14f   : > { %vm917_vm7 = vmor %vm915_vm5, %vm916_vm6 }
 0x150   : > { %v911_v33 = vmul.f32 %v1346_v32, %v910_v6 }
 0x152   : > { %v912_v34 = vmul.f32 0.5, %v911_v33 }
 0x154   : > { %v913_v35 = vsub.f32 1.5, %v912_v34 }
 0x156   : > { %v914_v17 = vmul.f32 %v1346_v32, %v913_v35 }
 0x158   : > { %v918_v37 = vsel %vm917_vm7, %v1346_v32, %v914_v17  ;;  %v895_v32 = vld [vmem:[#allocation2 + $0x78] sm:$0xff] }
 0x159   : > { %v919_v39 = vmul.f32 %v918_v37, %v907_v36  ;;  %v883_v36 = vld [vmem:[#allocation2 + $0x18] sm:$0xff] }
 0x15a   : > { %v887_v17 = vld [vmem:[#allocation2 + $0x38] sm:$0xff] }
 0x15b   : > { %v921_v45 = vmul.f32 %v919_v39, %v898_v25  ;;  %v1753_v47 = vperm.slane %v919_v39, 0 }
 0x15d   : > { %v922_v53 = vsub.f32 %v920_v31, %v921_v45  ;;  %v934_v54 = vmul.f32 %v1753_v47, %v888_v38  ;;  %v938_v57 = vmul.f32 %v1753_v47, %v892_v41  ;;  %v926_v55 = vmul.f32 %v1753_v47, %v880_v43 }
 0x15e   : > { %v930_v56 = vmul.f32 %v1753_v47, %v884_v44  ;;  %v935_v59 = vmul.f32 %v1753_v47, %v889_v48  ;;  %v939_v63 = vmul.f32 %v1753_v47, %v893_v49  ;;  %v927_v60 = vmul.f32 %v1753_v47, %v881_v51 }
 0x15f   : > { %v1762_v61 = vperm.slane %v922_v53, 0  ;;  %v931_v62 = vmul.f32 %v1753_v47, %v885_v50  ;;  %v936_v20 = vmul.f32 %v1753_v47, %v890_v9  ;;  %v940_v21 = vmul.f32 %v1753_v47, %v894_v10 }
 0x160   : > { %v928_v24 = vmul.f32 %v1753_v47, %v882_v42  ;;  %v932_v40 = vmul.f32 %v1753_v47, %v886_v16  ;;  %v937_v37 = vmul.f32 %v1753_v47, %v891_v0  ;;  %v941_v38 = vmul.f32 %v1753_v47, %v895_v32 }
 0x161   : > { %v953_v1 = vadd.f32 %v1762_v61, %v934_v54  ;;  %v957_v2 = vadd.f32 %v1762_v61, %v938_v57  ;;  %v945_v3 = vadd.f32 %v1762_v61, %v926_v55  ;;  %v949_v15 = vadd.f32 %v1762_v61, %v930_v56 }
 0x162   : > { %v954_v4 = vadd.f32 %v1762_v61, %v935_v59  ;;  %v958_v7 = vadd.f32 %v1762_v61, %v939_v63  ;;  %v946_v8 = vadd.f32 %v1762_v61, %v927_v60  ;;  %v950_v30 = vadd.f32 %v1762_v61, %v931_v62 }
 0x163   : > { %vm970_vm8 = vcmp.ge.f32.partialorder %v953_v1, 0.0  ;;  %v987_v12 = vmul.f32 %v1765_v5, %v953_v1  ;;  %vm974_vm9 = vcmp.ge.f32.partialorder %v957_v2, 0.0  ;;  %v991_v13 = vmul.f32 %v1765_v5, %v957_v2 }
 0x164   : > { %vm962_vm10 = vcmp.ge.f32.partialorder %v945_v3, 0.0  ;;  %v979_v11 = vmul.f32 %v1765_v5, %v945_v3  ;;  %vm966_vm11 = vcmp.ge.f32.partialorder %v949_v15, 0.0  ;;  %v983_v14 = vmul.f32 %v1765_v5, %v949_v15 }
 0x165   : > { %v1003_v18 = vsel %vm970_vm8, %v953_v1, %v987_v12  ;;  %v1007_v19 = vsel %vm974_vm9, %v957_v2, %v991_v13  ;;  %v988_v25 = vmul.f32 %v1765_v5, %v954_v4  ;;  %v992_v26 = vmul.f32 %v1765_v5, %v958_v7  ;;  %v1344_v2 = vld [vmem:[%s1906_s7] ss:$0 sm:$0xff] }
 0x166   : > { %1295 = vmatmul.msk.f32.vlgmr.msra.gmra.mxu2 %vm1017_vm4, %v1003_v18  ;;  %1299 = vmatmul.msk.f32.vlgmr.msra.gmra.mxu3 %vm1017_vm4, %v1007_v19  ;;  %v995_v22 = vsel %vm962_vm10, %v945_v3, %v979_v11  ;;  %v999_v23 = vsel %vm966_vm11, %v949_v15, %v983_v14  ;;  %vm971_vm12 = vcmp.ge.f32.partialorder %v954_v4, 0.0  ;;  %vm975_vm13 = vcmp.ge.f32.partialorder %v958_v7, 0.0 }
 0x167   : > { %1287 = vmatmul.msk.f32.vlgmr.msra.gmra.mxu0 %vm1017_vm4, %v995_v22  ;;  %1291 = vmatmul.msk.f32.vlgmr.msra.gmra.mxu1 %vm1017_vm4, %v999_v23  ;;  %v980_v46 = vmul.f32 %v1765_v5, %v946_v8  ;;  %v984_v52 = vmul.f32 %v1765_v5, %v950_v30  ;;  %vm963_vm14 = vcmp.ge.f32.partialorder %v946_v8, 0.0  ;;  %vm967_vm15 = vcmp.ge.f32.partialorder %v950_v30, 0.0 }
 0x168   : > { %v1004_v27 = vsel %vm971_vm12, %v954_v4, %v988_v25  ;;  %v1008_v58 = vsel %vm975_vm13, %v958_v7, %v992_v26  ;;  %v955_v28 = vadd.f32 %v1762_v61, %v936_v20  ;;  %v959_v29 = vadd.f32 %v1762_v61, %v940_v21 }
 0x169   : > { %v996_v6 = vsel %vm963_vm14, %v946_v8, %v980_v46  ;;  %v1000_v33 = vsel %vm967_vm15, %v950_v30, %v984_v52  ;;  %v947_v34 = vadd.f32 %v1762_v61, %v928_v24  ;;  %v951_v35 = vadd.f32 %v1762_v61, %v932_v40 }
 0x16a   : > { %vm972_vm0 = vcmp.ge.f32.partialorder %v955_v28, 0.0  ;;  %v989_v39 = vmul.f32 %v1765_v5, %v955_v28  ;;  %vm976_vm1 = vcmp.ge.f32.partialorder %v959_v29, 0.0  ;;  %v993_v31 = vmul.f32 %v1765_v5, %v959_v29 }
 0x16b   : > { %v981_v41 = vmul.f32 %v1765_v5, %v947_v34  ;;  %v985_v43 = vmul.f32 %v1765_v5, %v951_v35  ;;  %v929_v44 = vmul.f32 %v1753_v47, %v883_v36  ;;  %v933_v45 = vmul.f32 %v1753_v47, %v887_v17 }
 0x16c   : > { %vm964_vm2 = vcmp.ge.f32.partialorder %v947_v34, 0.0  ;;  %vm968_vm3 = vcmp.ge.f32.partialorder %v951_v35, 0.0  ;;  %v1005_v48 = vsel %vm972_vm0, %v955_v28, %v989_v39  ;;  %v1009_v49 = vsel %vm976_vm1, %v959_v29, %v993_v31 }
 0x16d   : > { %v956_v51 = vadd.f32 %v1762_v61, %v937_v37  ;;  %v960_v50 = vadd.f32 %v1762_v61, %v941_v38  ;;  %v997_v53 = vsel %vm964_vm2, %v947_v34, %v981_v41  ;;  %v1001_v54 = vsel %vm968_vm3, %v951_v35, %v985_v43 }
 0x16e   : > { %1296 = vmatmul.msk.f32.gmra.mxu2 %vm1017_vm4, %v1004_v27  ;;  %1300 = vmatmul.msk.f32.gmra.mxu3 %vm1017_vm4, %v1008_v58  ;;  %v948_v57 = vadd.f32 %v1762_v61, %v929_v44  ;;  %v952_v55 = vadd.f32 %v1762_v61, %v933_v45  ;;  %vm1137_vm9 = vcmask 80896  }
 0x16f   : > { %1288 = vmatmul.msk.f32.gmra.mxu0 %vm1017_vm4, %v996_v6  ;;  %1292 = vmatmul.msk.f32.gmra.mxu1 %vm1017_vm4, %v1000_v33  ;;  %v990_v47 = vmul.f32 %v1765_v5, %v956_v51  ;;  %v994_v56 = vmul.f32 %v1765_v5, %v960_v50  ;;  %vm973_vm5 = vcmp.ge.f32.partialorder %v956_v51, 0.0  ;;  %vm977_vm6 = vcmp.ge.f32.partialorder %v960_v50, 0.0 }
 0x170   : > { %v982_v59 = vmul.f32 %v1765_v5, %v948_v57  ;;  %v986_v63 = vmul.f32 %v1765_v5, %v952_v55  ;;  %vm965_vm7 = vcmp.ge.f32.partialorder %v948_v57, 0.0  ;;  %vm969_vm8 = vcmp.ge.f32.partialorder %v952_v55, 0.0 }
 0x171   : > { %v1006_v60 = vsel %vm973_vm5, %v956_v51, %v990_v47  ;;  %v1010_v61 = vsel %vm977_vm6, %v960_v50, %v994_v56 }
 0x172   : > { %v998_v62 = vsel %vm965_vm7, %v948_v57, %v982_v59  ;;  %v1002_v1 = vsel %vm969_vm8, %v952_v55, %v986_v63 }
 0x176   : > { %1297 = vmatmul.msk.f32.gmra.mxu2 %vm1017_vm4, %v1005_v48  ;;  %1301 = vmatmul.msk.f32.gmra.mxu3 %vm1017_vm4, %v1009_v49 }
 0x177   : > { %1289 = vmatmul.msk.f32.gmra.mxu0 %vm1017_vm4, %v997_v53  ;;  %1293 = vmatmul.msk.f32.gmra.mxu1 %vm1017_vm4, %v1001_v54 }
 0x17e   : > { %1298 = vmatmul.msk.f32.gmra.mxu2 %vm1017_vm4, %v1006_v60  ;;  %1302 = vmatmul.msk.f32.gmra.mxu3 %vm1017_vm4, %v1010_v61 }
 0x17f   : > { %1290 = vmatmul.msk.f32.gmra.mxu0 %vm1017_vm4, %v998_v62  ;;  %1294 = vmatmul.msk.f32.gmra.mxu1 %vm1017_vm4, %v1002_v1 }
 0x1e4   : > { %v1089_v3 = vpop.f32.mrf.mxu0  ;;  %v1101_v5 = vpop.f32.mrf.mxu1 }
 0x1e5   : > { %v1090_v15 = vadd.f32 %v1344_v2, %v1089_v3  ;;  %v1102_v4 = vadd.f32 %v1344_v2, %v1101_v5 }
 0x1e7   : > { %1138 = vst.msk [vmem:[%s1908_s9] sm:$0xff] %vm1137_vm9, %v1090_v15 }
 0x1e8   : > { %1142 = vst.msk [vmem:[%s1908_s9 + $0x20] sm:$0xff] %vm1137_vm9, %v1102_v4 }
 0x1e9   : > { %v1113_v7 = vpop.f32.mrf.mxu2  ;;  %v1125_v8 = vpop.f32.mrf.mxu3 }
 0x1ea   : > { %v1114_v30 = vadd.f32 %v1344_v2, %v1113_v7  ;;  %v1126_v9 = vadd.f32 %v1344_v2, %v1125_v8 }
 0x1ec   : > { %1146 = vst.msk [vmem:[%s1908_s9 + $0x40] sm:$0xff] %vm1137_vm9, %v1114_v30  ;;  %v1092_v10 = vpop.f32.mrf.mxu0  ;;  %v1104_v12 = vpop.f32.mrf.mxu1 }
 0x1ed   : > { %1150 = vst.msk [vmem:[%s1908_s9 + $0x60] sm:$0xff] %vm1137_vm9, %v1126_v9  ;;  %v1093_v13 = vadd.f32 %v1344_v2, %v1092_v10  ;;  %v1105_v42 = vadd.f32 %v1344_v2, %v1104_v12 }
 0x1ef   : > { %1139 = vst.msk [vmem:[%s1908_s9 + $0x8] sm:$0xff] %vm1137_vm9, %v1093_v13 }
 0x1f0   : > { %1143 = vst.msk [vmem:[%s1908_s9 + $0x28] sm:$0xff] %vm1137_vm9, %v1105_v42 }
 0x1f1   : > { %v1116_v11 = vpop.f32.mrf.mxu2  ;;  %v1128_v14 = vpop.f32.mrf.mxu3 }
 0x1f2   : > { %v1117_v16 = vadd.f32 %v1344_v2, %v1116_v11  ;;  %v1129_v18 = vadd.f32 %v1344_v2, %v1128_v14 }
 0x1f4   : > { %1147 = vst.msk [vmem:[%s1908_s9 + $0x48] sm:$0xff] %vm1137_vm9, %v1117_v16  ;;  %v1095_v19 = vpop.f32.mrf.mxu0  ;;  %v1107_v20 = vpop.f32.mrf.mxu1 }
 0x1f5   : > { %1151 = vst.msk [vmem:[%s1908_s9 + $0x68] sm:$0xff] %vm1137_vm9, %v1129_v18  ;;  %v1096_v21 = vadd.f32 %v1344_v2, %v1095_v19  ;;  %v1108_v22 = vadd.f32 %v1344_v2, %v1107_v20 }
 0x1f7   : > { %1140 = vst.msk [vmem:[%s1908_s9 + $0x10] sm:$0xff] %vm1137_vm9, %v1096_v21 }
 0x1f8   : > { %1144 = vst.msk [vmem:[%s1908_s9 + $0x30] sm:$0xff] %vm1137_vm9, %v1108_v22 }
 0x1f9   : > { %v1119_v23 = vpop.f32.mrf.mxu2  ;;  %v1131_v24 = vpop.f32.mrf.mxu3 }
 0x1fa   : > { %v1120_v25 = vadd.f32 %v1344_v2, %v1119_v23  ;;  %v1132_v26 = vadd.f32 %v1344_v2, %v1131_v24 }
 0x1fc   : > { %1148 = vst.msk [vmem:[%s1908_s9 + $0x50] sm:$0xff] %vm1137_vm9, %v1120_v25  ;;  %v1098_v40 = vpop.f32.mrf.mxu0  ;;  %v1110_v46 = vpop.f32.mrf.mxu1 }
 0x1fd   : > { %1152 = vst.msk [vmem:[%s1908_s9 + $0x70] sm:$0xff] %vm1137_vm9, %v1132_v26  ;;  %v1099_v52 = vadd.f32 %v1344_v2, %v1098_v40  ;;  %v1111_v27 = vadd.f32 %v1344_v2, %v1110_v46 }
 0x1ff   : > { %1141 = vst.msk [vmem:[%s1908_s9 + $0x18] sm:$0xff] %vm1137_vm9, %v1099_v52 }
 0x200   : > { %1145 = vst.msk [vmem:[%s1908_s9 + $0x38] sm:$0xff] %vm1137_vm9, %v1111_v27 }
 0x201   : > { %v1122_v58 = vpop.f32.mrf.mxu2  ;;  %v1134_v28 = vpop.f32.mrf.mxu3 }
 0x202   : > { %v1123_v29 = vadd.f32 %v1344_v2, %v1122_v58  ;;  %v1135_v0 = vadd.f32 %v1344_v2, %v1134_v28 }
 0x204   : > { %1149 = vst.msk [vmem:[%s1908_s9 + $0x58] sm:$0xff] %vm1137_vm9, %v1123_v29 }
 0x205   : > { %1153 = vst.msk [vmem:[%s1908_s9 + $0x78] sm:$0xff] %vm1137_vm9, %v1135_v0 }
 0x206 PF: > { %s20_s13 = sadd.s32 1, %s1369_s13   ;;  %s1909_s11 = smov %s1365_s12 }
 0x207   : > { %p17_p6 = scmp.ge.s32.totalorder %s20_s13, 4   ;;  %s1910_s12 = smov %s1912_s8 }
 0x209   :  { %19 = sbr.rel (!%p17_p6) target bundleno = 2 (0x2), region = 103 }

</bundles_post_ra>
